<compile_context>
chip_gen: v5e
topology: v5e:2x2
jax: 0.10.0
libtpu: 0.0.40
codegen_flags: <defaults>
</compile_context>

<pallas_src>
import math
import numpy as np
import jax
import jax.numpy as jnp
from jax import lax
from jax.experimental import pallas as pl
from jax.experimental.pallas import tpu as pltpu


# ---------------- activation table (numpy ref + jnp kernel versions) --------
ACT_TABLE = {
    "tanh":    (np.tanh, jnp.tanh),
    "silu":    (lambda x: x / (1.0 + np.exp(-x)), lambda x: x * jax.nn.sigmoid(x)),
    "sigmoid": (lambda x: 1.0 / (1.0 + np.exp(-x)), jax.nn.sigmoid),
    "abs":     (np.abs, jnp.abs),
    "relu":    (lambda x: np.maximum(x, 0.0), lambda x: jnp.maximum(x, 0.0)),
}

# f(x) = (A*x + B) * sigmoid(p*x) + C   -> one shared sigmoid (EUP) pass
SIG_FAMILY = {
    "silu":    (1.0, 1.0, 0.0, 0.0),
    "sigmoid": (1.0, 0.0, 1.0, 0.0),
    "tanh":    (2.0, 0.0, 2.0, -1.0),   # tanh(x) = 2*sigmoid(2x) - 1
}


def _normalize2mom_const(f_np, n=200):
    """c such that E_{x~N(0,1)}[(c*f(x))^2] == 1 via Gauss-Hermite quadrature.
    (Deterministic stand-in for e3nn's Monte-Carlo normalize2mom estimate.)"""
    nodes, weights = np.polynomial.hermite_e.hermegauss(n)
    m2 = float(np.sum(weights * f_np(nodes) ** 2) / np.sqrt(2.0 * np.pi))
    return 1.0 / np.sqrt(m2)


# ---------------- __init__ logic: resolve muls, align segments --------------
def build_activation(irreps, acts):
    """irreps: list of (mul, (l, p)) with l == 0 (scalars only).
       acts:   list of (mul, act_name); mul == -1 means 'remaining channels'.
       Returns (segments, n_channels), segments = [(start, mul, name, const)]."""
    irreps = [(m, lp) for m, lp in irreps if m > 0]
    n1 = sum(m for m, _ in irreps)
    n2 = sum(m for m, _ in acts if m > 0)
    acts = list(acts)
    for i, (mul, name) in enumerate(acts):
        if mul == -1:
            assert n1 - n2 >= 0
            acts[i] = (n1 - n2, name)
    assert n1 == sum(m for m, _ in acts)

    irreps = list(irreps)
    i = 0
    while i < len(irreps):
        mul_r, lp = irreps[i]
        mul_a, name = acts[i]
        if mul_r < mul_a:
            acts[i] = (mul_r, name)
            acts.insert(i + 1, (mul_a - mul_r, name))
        if mul_a < mul_r:
            irreps[i] = (mul_a, lp)
            irreps.insert(i + 1, (mul_r - mul_a, lp))
        i += 1

    xs = np.linspace(0.0, 10.0, 256)
    segments = []
    start = 0
    for (mul, (l, p_in)), (mul_a, name) in zip(irreps, acts):
        assert mul == mul_a and l == 0
        f_np, _ = ACT_TABLE[name]
        a1, a2 = f_np(xs), f_np(-xs)
        if np.abs(a1 - a2).max() < np.abs(a1).max() * 1e-10:
            p_act = 1
        elif np.abs(a1 + a2).max() < np.abs(a1).max() * 1e-10:
            p_act = -1
        else:
            p_act = 0
        p = p_act if p_in == -1 else p_in
        if p_in != 0 and p == 0:
            raise ValueError("warning! the parity is violated")
        c = _normalize2mom_const(f_np)
        segments.append((start, mul, name, c))
        start += mul
    return segments, start


# ---------------- static plan: per-lane coefficient / mask tables -----------
def _plan(segments, n_ch):
    names = []
    for _, _, name, _ in segments:
        if name not in names:
            names.append(name)
    sig_names = [n for n in names if n in SIG_FAMILY]
    other_names = [n for n in names if n not in SIG_FAMILY]
    has_sig = bool(sig_names)

    base_other = None if has_sig else other_names[0]
    masked_others = other_names if has_sig else other_names[1:]

    n_rows = 1 + (4 if has_sig else 0) + len(masked_others)
    tab = np.zeros((n_rows, n_ch), np.float32)
    ROW_SCALE = 0
    mask_row0 = 5 if has_sig else 1
    mask_rows = {name: mask_row0 + i for i, name in enumerate(masked_others)}

    for start, mul, name, c in segments:
        sl = slice(start, start + mul)
        tab[ROW_SCALE, sl] = c
        if name in SIG_FAMILY:
            p, A, B, C = SIG_FAMILY[name]
            tab[1, sl] = p
            tab[2, sl] = A
            tab[3, sl] = B
            tab[4, sl] = C
        elif name in mask_rows:
            tab[mask_rows[name], sl] = 1.0
        # else: base_other group -> selected by default, nothing to mark

    plan = dict(
        has_sig=has_sig,
        base_other=base_other,
        masked=[(mask_rows[n], ACT_TABLE[n][1]) for n in masked_others],
    )
    return plan, tab


# ---------------- Pallas kernel ---------------------------------------------
def _make_kernel(plan):
    has_sig = plan["has_sig"]
    base_fn = ACT_TABLE[plan["base_other"]][1] if plan["base_other"] is not None else None
    masked = plan["masked"]

    def kernel(tab_ref, x_ref, o_ref):
        # Compute in f32 (safe on v5e which lacks bf16 VPU/EUP); cast at store.
        x = x_ref[...].astype(jnp.float32)
        t = tab_ref[...]  # (n_rows, lane_block) f32
        if has_sig:
            # One sigmoid pass serves every sigmoid-family activation.
            s = jax.nn.sigmoid(x * t[1:2, :])
            out = (x * t[2:3, :] + t[3:4, :]) * s + t[4:5, :]
        else:
            out = base_fn(x)
        for row, fn in masked:
            # (1, W) compare, broadcast in the select.
            out = jnp.where(t[row:row + 1, :] > 0.5, fn(x), out)
        # Single per-lane normalize2mom multiply (constants folded on host).
        o_ref[...] = (out * t[0:1, :]).astype(o_ref.dtype)

    return kernel


# ---------------- block sizing ------------------------------------------------
def _default_block_bytes():
    try:
        kind = jax.devices()[0].device_kind.lower()
    except Exception:
        return 4 << 20
    if "v5 lite" in kind or "v5e" in kind or "v5lite" in kind:
        return 2 << 20      # v5e: 16 MiB default scoped VMEM; keep blocks modest
    if "v6" in kind or "trillium" in kind:
        return 4 << 20
    if "v7" in kind:
        return 8 << 20      # v7x: 3.2 TB/s HBM -> amortize per-step overhead
    return 4 << 20


def _ceil_div(a, b):
    return -(-a // b)


# ---------------- wrapper -----------------------------------------------------
def activation_forward(x, segments, n_ch, target_block_bytes=None):
    """Apply the per-segment activations along the last axis of x."""
    if not segments:  # empty acts -> zero-width channel axis
        return jnp.zeros(x.shape[:-1] + (0,), x.dtype)
    orig_shape = x.shape
    assert orig_shape[-1] == n_ch, "channel axis mismatch"
    rows = int(np.prod(orig_shape[:-1]))
    if rows == 0:
        return jnp.zeros(orig_shape, x.dtype)

    if target_block_bytes is None:
        target_block_bytes = _default_block_bytes()

    plan, tab_np = _plan(segments, n_ch)

    itemsize = np.dtype(x.dtype).itemsize
    sub = {4: 8, 2: 16, 1: 32}.get(itemsize, 8)  # sublane tile per dtype

    # Lane-dense folding: make the last (lane) dim a multiple of 128.
    fold = 128 // math.gcd(n_ch, 128)
    W = n_ch * fold

    x2 = x.reshape(rows, n_ch)
    pad_rows = (-rows) % fold          # minimal pad: only to a multiple of fold
    if pad_rows:
        x2 = jnp.pad(x2, ((0, pad_rows), (0, 0)))
    rows_f = rows + pad_rows
    folded_rows = rows_f // fold
    xf = x2.reshape(folded_rows, W)

    # Per-lane coefficient / mask / scale table (channel = lane % n_ch).
    tab = jnp.asarray(np.tile(tab_np, (1, fold)))  # (n_rows_tab, W) f32
    n_rows_tab = tab_np.shape[0]

    # ---- block geometry -----------------------------------------------------
    if W * itemsize * sub > target_block_bytes:
        # Huge W (odd / large channel counts): block the lane axis too.
        lane_block = max(128, (target_block_bytes // (sub * itemsize)) // 128 * 128)
        lane_block = min(lane_block, W)
        block_rows = sub
    else:
        lane_block = W
        block_rows = max(sub, (target_block_bytes // (W * itemsize)) // sub * sub)
    block_rows = min(block_rows, _ceil_div(folded_rows, sub) * sub)

    n_lane_blocks = _ceil_div(W, lane_block)
    n_row_blocks = _ceil_div(folded_rows, block_rows)

    # Megacore: guarantee >= 2 parallel blocks when there is enough work.
    if n_row_blocks * n_lane_blocks == 1 and folded_rows >= 2 * sub:
        half = (folded_rows + 1) // 2
        block_rows = _ceil_div(half, sub) * sub
        n_row_blocks = _ceil_div(folded_rows, block_rows)

    # VMEM budget: 2 input bufs + 2 output bufs + table (double-buffered).
    live_bytes = 4 * block_rows * lane_block * itemsize + 2 * n_rows_tab * lane_block * 4
    vmem_limit = int(min(48 << 20, max(32 << 20, int(live_bytes * 1.5))))

    out = pl.pallas_call(
        _make_kernel(plan),
        out_shape=jax.ShapeDtypeStruct((folded_rows, W), x.dtype),
        grid_spec=pl.GridSpec(
            grid=(n_row_blocks, n_lane_blocks),
            in_specs=[
                pl.BlockSpec((n_rows_tab, lane_block), lambda i, j: (0, j)),   # tables
                pl.BlockSpec((block_rows, lane_block), lambda i, j: (i, j)),   # features
            ],
            out_specs=pl.BlockSpec((block_rows, lane_block), lambda i, j: (i, j)),
        ),
        compiler_params=pltpu.CompilerParams(
            dimension_semantics=("parallel", "parallel"),
            vmem_limit_bytes=vmem_limit,
        ),
    )(tab, xf)

    out = out.reshape(rows_f, n_ch)
    if pad_rows:
        out = out[:rows]
    return out.reshape(orig_shape)


# ---------------- plain-JAX reference (mirrors torch forward) ---------------
def activation_reference(x, segments):
    outs = []
    for start, mul, name, c in segments:
        f_jnp = ACT_TABLE[name][1]
        outs.append(f_jnp(lax.slice_in_dim(x, start, start + mul, axis=-1)) * c)
    if outs:
        return jnp.concatenate(outs, axis=-1).astype(x.dtype)
    return jnp.zeros(x.shape[:-1] + (0,), x.dtype)


if __name__ == "__main__":
    # 64 scalar channels: irreps = 32x0e + 32x0e,
    # acts = 16x tanh + 32x silu + (-1 -> 16x) abs.  Exercises mul=-1 resolution
    # and the irreps/acts re-segmentation logic.
    # TODO(synk): normalize2mom constants use Gauss-Hermite quadrature, not
    # e3nn's Monte-Carlo estimate, so values differ from PyTorch at ~1e-3 level.
    irreps = [(32, (0, 1)), (32, (0, 1))]
    acts = [(16, "tanh"), (32, "silu"), (-1, "abs")]
    segments, n_ch = build_activation(irreps, acts)

    key = jax.random.PRNGKey(0)

    # 1) small, divisible case
    x = jax.random.normal(key, (2, 8, n_ch), dtype=jnp.float32)
    out = jax.block_until_ready(activation_forward(x, segments, n_ch))
    ref = activation_reference(x, segments)
    assert out.shape == x.shape
    np.testing.assert_allclose(np.asarray(out), np.asarray(ref), rtol=1e-5, atol=1e-5)

    # 2) ragged leading dims (exercise the minimal fold-padding path)
    x2 = jax.random.normal(jax.random.PRNGKey(1), (3, 5, n_ch), dtype=jnp.float32)
    out2 = jax.block_until_ready(activation_forward(x2, segments, n_ch))
    np.testing.assert_allclose(np.asarray(out2),
                               np.asarray(activation_reference(x2, segments)),
                               rtol=1e-5, atol=1e-5)

    # 3) multi-block grid with a partial last block (small block budget forces it)
    x3 = jax.random.normal(jax.random.PRNGKey(2), (7, 300, n_ch), dtype=jnp.float32)
    out3 = jax.block_until_ready(
        activation_forward(x3, segments, n_ch, target_block_bytes=64 * 1024))
    np.testing.assert_allclose(np.asarray(out3),
                               np.asarray(activation_reference(x3, segments)),
                               rtol=1e-5, atol=1e-5)

    # 4) no sigmoid-family groups at all (abs only)
    seg_abs, n_abs = build_activation([(64, (0, 1))], [(-1, "abs")])
    x4 = jax.random.normal(jax.random.PRNGKey(3), (4, n_abs), dtype=jnp.float32)
    out4 = jax.block_until_ready(activation_forward(x4, seg_abs, n_abs))
    np.testing.assert_allclose(np.asarray(out4),
                               np.asarray(activation_reference(x4, seg_abs)),
                               rtol=1e-5, atol=1e-5)

    print("KERNEL_OK")
</pallas_src>

<mosaic_0001>
module attributes {stable_mosaic.version = 11 : i64} {
  func.func @kernel(%arg0: i32, %arg1: i32, %arg2: memref<6x128xf32, #tpu.memory_space<vmem>>, %arg3: memref<8x128xf32, #tpu.memory_space<vmem>>, %arg4: memref<8x128xf32, #tpu.memory_space<vmem>>) attributes {dimension_semantics = [#tpu.dimension_semantics<parallel>, #tpu.dimension_semantics<parallel>], iteration_bounds = array<i64: 1, 1>, scalar_prefetch = 0 : i64, scratch_operands = 0 : i64, tpu.core_type = #tpu.core_type<tc>, window_params = [{transform_indices = @transform_0, window_bounds = array<i64: 6, 128>}, {transform_indices = @transform_1, window_bounds = array<i64: 8, 128>}, {transform_indices = @transform_2, window_bounds = array<i64: 8, 128>}]} {
    %c0 = arith.constant 0 : index
    %c0_0 = arith.constant 0 : index
    %0 = vector.load %arg3[%c0, %c0_0] : memref<8x128xf32, #tpu.memory_space<vmem>>, vector<8x128xf32>
    %c0_1 = arith.constant 0 : index
    %c0_2 = arith.constant 0 : index
    %1 = vector.load %arg2[%c0_1, %c0_2] : memref<6x128xf32, #tpu.memory_space<vmem>>, vector<6x128xf32>
    %2 = vector.extract_strided_slice %1 {offsets = [1, 0], sizes = [1, 128], strides = [1, 1]} : vector<6x128xf32> to vector<1x128xf32>
    %3 = vector.broadcast %2 : vector<1x128xf32> to vector<8x128xf32>
    %4 = arith.mulf %0, %3 : vector<8x128xf32>
    %5 = arith.negf %4 : vector<8x128xf32>
    %6 = math.exp %5 : vector<8x128xf32>
    %cst = arith.constant 1.000000e+00 : f32
    %7 = vector.broadcast %cst : f32 to vector<8x128xf32>
    %8 = arith.addf %7, %6 : vector<8x128xf32>
    %9 = arith.divf %7, %8 : vector<8x128xf32>
    %10 = vector.extract_strided_slice %1 {offsets = [2, 0], sizes = [1, 128], strides = [1, 1]} : vector<6x128xf32> to vector<1x128xf32>
    %11 = vector.broadcast %10 : vector<1x128xf32> to vector<8x128xf32>
    %12 = arith.mulf %0, %11 : vector<8x128xf32>
    %13 = vector.extract_strided_slice %1 {offsets = [3, 0], sizes = [1, 128], strides = [1, 1]} : vector<6x128xf32> to vector<1x128xf32>
    %14 = vector.broadcast %13 : vector<1x128xf32> to vector<8x128xf32>
    %15 = arith.addf %12, %14 : vector<8x128xf32>
    %16 = arith.mulf %15, %9 : vector<8x128xf32>
    %17 = vector.extract_strided_slice %1 {offsets = [4, 0], sizes = [1, 128], strides = [1, 1]} : vector<6x128xf32> to vector<1x128xf32>
    %18 = vector.broadcast %17 : vector<1x128xf32> to vector<8x128xf32>
    %19 = arith.addf %16, %18 : vector<8x128xf32>
    %20 = vector.extract_strided_slice %1 {offsets = [5, 0], sizes = [1, 128], strides = [1, 1]} : vector<6x128xf32> to vector<1x128xf32>
    %cst_3 = arith.constant 5.000000e-01 : f32
    %21 = vector.broadcast %cst_3 : f32 to vector<1x128xf32>
    %22 = arith.cmpf ogt, %20, %21 : vector<1x128xf32>
    %23 = math.absf %0 : vector<8x128xf32>
    %24 = vector.shape_cast %22 : vector<1x128xi1> to vector<1x128xi1>
    %25 = vector.broadcast %24 : vector<1x128xi1> to vector<8x128xi1>
    %26 = arith.select %25, %23, %19 : vector<8x128xi1>, vector<8x128xf32>
    %27 = vector.extract_strided_slice %1 {offsets = [0, 0], sizes = [1, 128], strides = [1, 1]} : vector<6x128xf32> to vector<1x128xf32>
    %28 = vector.broadcast %27 : vector<1x128xf32> to vector<8x128xf32>
    %29 = arith.mulf %26, %28 : vector<8x128xf32>
    %c0_4 = arith.constant 0 : index
    %c0_5 = arith.constant 0 : index
    %30 = vector.load %arg4[%c0_4, %c0_5] : memref<8x128xf32, #tpu.memory_space<vmem>>, vector<8x128xf32>
    tpu.vector_store %arg4[%c0_4, %c0_5], %29 {strides = array<i32>} : memref<8x128xf32, #tpu.memory_space<vmem>>, vector<8x128xf32>,
    return
  }
  func.func @transform_0(%arg0: i32, %arg1: i32) -> (i32, i32) {
    %c0_i32 = arith.constant 0 : i32
    %c0_i32_0 = arith.constant 0 : i32
    return %c0_i32, %arg1 : i32, i32
  }
  func.func @transform_1(%arg0: i32, %arg1: i32) -> (i32, i32) {
    %c0_i32 = arith.constant 0 : i32
    return %arg0, %arg1 : i32, i32
  }
  func.func @transform_2(%arg0: i32, %arg1: i32) -> (i32, i32) {
    %c0_i32 = arith.constant 0 : i32
    return %arg0, %arg1 : i32, i32
  }
}

</mosaic_0001>

<bundles_post_ra>
// kernel: tpu_custom_call.1
= control target key start
LH: loop header
LB: loop body
LE: loop exit
PB: predicated region body
PF: predicated region fallthrough
CT: control target
= control target key end

     0   :  { %7 = vsyncpa [#allocation3], 0  ;;  %s212_s0 = inlined_call_operand.hbm [shape: f32[6,128], index: 0, kind: input, shape index: {}]   ;;  %s213_s1 = inlined_call_operand.hbm [shape: f32[8,128], index: 1, kind: input, shape index: {}]   ;;  %s214_s2 = inlined_call_operand.hbm [shape: f32[8,128], index: 2, kind: output, shape index: {}]  }
   0x1   :  { %8 = vsyncpa [#allocation6], 0 }
   0x2   :  { %9 = vsyncpa [#allocation4], 0  ;;  %s15_s11 = sshll.u32 %s212_s0, 4  ;;  %s184_s12 = smov [#allocation2]   ;;  %s16_s11 = int_to_ptr.hbm [resolvable:$true] %s15_s11 }
   0x3   :  { %s17_s13 = sshll.u32 %s184_s12, 4  ;;  %s26_s16 = sshll.u32 %s213_s1, 4  ;;  %s18_s13 = int_to_ptr.vmem [resolvable:$true] %s17_s13  ;;  %s27_s16 = int_to_ptr.hbm [resolvable:$true] %s26_s16 }
   0x4   :  { %20 = dma.hbm_to_vmem [thread:$0]  %s16_s11, 128, %s18_s13, [#allocation3]  }
   0x5   :  { %s185_s17 = smov [#allocation5]  }
   0x6   :  { %s28_s18 = sshll.u32 %s185_s17, 4  ;;  %s29_s18 = int_to_ptr.vmem [resolvable:$true] %s28_s18 }
   0x7   :  { %31 = dma.hbm_to_vmem [thread:$0]  %s27_s16, 128, %s29_s18, [#allocation6]  }
   0x8   :  { %178 = dma.done.wait [#allocation3], 128  }
   0x9   :  { %179 = vsyncadd [#allocation3], 4294967168 }
   0xa   :  { %180 = dma.done.wait [#allocation6], 128  }
   0xb   :  { %181 = vsyncadd [#allocation6], 4294967168  ;;  %v40_v0 = vld [vmem:[#allocation5] sm:$0xff]  ;;  %v41_v1 = vld [vmem:[#allocation2] sm:$0x3f]  ;;  %v186_v16 = vmov 0  }
   0xc   :  { %v42_v2 = vperm.slane %v41_v1, 1  ;;  %v63_v7 = vperm.slane %v41_v1, 2  ;;  %v65_v12 = vperm.slane %v41_v1, 3  ;;  %vm70_vm0 = vcmp.gt.f32.partialorder %v41_v1, 0.5  ;;  %s187_s0 = smov [#allocation7]   ;;  %s86_s21 = sshll.u32 %s214_s2, 4  ;;  %s87_s21 = int_to_ptr.hbm [resolvable:$true] %s86_s21 }
   0xd   :  { %v72_v17 = vsel %vm70_vm0, 1, %v186_v16  ;;  %v68_v23 = vperm.slane %v41_v1, 4  ;;  %v71_v26 = vand.u32 2147483647, %v40_v0  ;;  %v76_v27 = vperm.slane %v41_v1, 0  ;;  %s84_s1 = sshll.u32 %s187_s0, 4  ;;  %s85_s1 = int_to_ptr.vmem [resolvable:$true] %s84_s1 }
   0xe   :  { %v43_v3 = vmul.f32 %v42_v2, %v40_v0  ;;  %v64_v11 = vmul.f32 %v63_v7, %v40_v0  ;;  %v73_v21 = vperm.slane %v72_v17, 5 }
  0x10   :  { %v97_v4 = vmul.f32 -1.442695, %v43_v3  ;;  %v66_v20 = vadd.f32 %v65_v12, %v64_v11  ;;  %vm74_vm5 = vcmp.eq.s32.totalorder %v73_v21, 1 }
  0x12   :  { %102 = vpow2.f32 %v97_v4 }
  0x18   :  { %v103_v5 = vpop.eup %102 }
  0x19   :  { %v47_v6 = vadd.f32 1.0, %v103_v5 }
  0x1b   :  { %104 = vrcp.f32 %v47_v6  ;;  %v59_v10 = vand.u32 2147483648, %v47_v6  ;;  %vm53_vm1 = vweird.f32 %v47_v6  ;;  %v57_v14 = vand.u32 2147483647, %v47_v6 }
  0x1d   :  { %v60_v18 = vor.u32 1.1754944e-38, %v59_v10  ;;  %vm58_vm4 = vcmp.eq.f32.partialorder %v57_v14, 8.507059e+37 }
  0x21   :  { %v105_v8 = vpop.eup %104 }
  0x22   :  { %v49_v9 = vmul.f32 %v105_v8, %v47_v6  ;;  %vm54_vm2 = vweird.f32 %v105_v8 }
  0x23   :  { %vm55_vm3 = vmor %vm53_vm1, %vm54_vm2 }
  0x24   :  { %v50_v13 = vsub.f32 1.0, %v49_v9 }
  0x26   :  { %v51_v15 = vmul.f32 %v105_v8, %v50_v13 }
  0x28   :  { %v52_v19 = vadd.f32 %v105_v8, %v51_v15 }
  0x2a   :  { %v56_v22 = vsel %vm55_vm3, %v105_v8, %v52_v19 }
  0x2b   :  { %v61_v24 = vsel %vm58_vm4, %v60_v18, %v56_v22 }
  0x2c   :  { %v67_v25 = vmul.f32 %v66_v20, %v61_v24 }
  0x2e   :  { %v69_v28 = vadd.f32 %v68_v23, %v67_v25 }
  0x30   :  { %v75_v29 = vsel %vm74_vm5, %v71_v26, %v69_v28 }
  0x31   :  { %v77_v30 = vmul.f32 %v76_v27, %v75_v29 }
  0x33   :  { %78 = vst [vmem:[#allocation7] sm:$0xff] %v77_v30 }
  0x34   :  { %89 = dma.vmem_to_hbm [thread:$0]  %s85_s1, 128, %s87_s21, [#allocation4]  }
  0x35   :  { %182 = dma.done.wait [#allocation4], 128  }
  0x36   :  { %183 = vsyncadd [#allocation4], 4294967168 }
  0x37   :  { %94 = vsyncpa [#allocation3], 1 }
  0x38   :  { %95 = vsyncpa [#allocation6], 1 }
  0x39   :  { %96 = vsyncpa [#allocation4], 1 }

</bundles_post_ra>
